<compile_context>
chip_gen: v5e
topology: v5e:2x2
jax: 0.10.0
libtpu: 0.0.40
codegen_flags: <defaults>
</compile_context>

<pallas_src>
import jax
import jax.numpy as jnp
from jax.experimental import pallas as pl
from jax.experimental.pallas import tpu as pltpu


LANES = 128             # vreg lane width; last dim of every block
ACC_ROWS = 32           # per-tile partial slab -> 4 independent accumulator vregs
SUBLANE_PACK = 32       # tile_rows multiple of 32 covers f32/bf16/int8 packing
MAX_TILE_ROWS = 8192    # 8192 * 128 * 4 B = 4 MiB per f32 input block
MIN_ROWS_FOR_PALLAS = SUBLANE_PACK   # below this a kernel launch is pure overhead
VMEM_LIMIT_BYTES = 32 * 1024 * 1024  # 16 MiB double-buffered working set + headroom


def _make_l1_partial_kernel(tile_rows, rows_valid, needs_mask):
    """Kernel: write sum(|a - b|) of this tile folded onto a (32, 128) slab."""

    def kernel(a_ref, b_ref, out_ref):
        diff = jnp.abs(a_ref[...].astype(jnp.float32) -
                       b_ref[...].astype(jnp.float32))
        if needs_mask:
            # Only the ragged final block has invalid rows; the compare is on a
            # (tile_rows, 1) column (cheap), the select broadcasts over lanes.
            row0 = pl.program_id(0) * tile_rows
            row_ids = jax.lax.broadcasted_iota(jnp.int32, (tile_rows, 1), 0) + row0
            diff = jnp.where(row_ids < rows_valid, diff, 0.0)
        # Fold (tile_rows, 128) onto (32, 128).  The reshape splits the sublane
        # dim on a tile boundary (32 % 8 == 0) so this lowers to plain VPU adds
        # over 4 independent vreg chains -- no XLU reduce, no narrow stores.
        out_ref[...] = jnp.sum(diff.reshape(-1, ACC_ROWS, LANES), axis=0)

    return kernel


def _l1_sum_tiled(a2d, b2d, tile_rows):
    """Sum of |a2d - b2d| over a (rows, 128) pair via a tiled Pallas reduction."""
    rows, cols = a2d.shape
    assert cols == LANES and tile_rows % ACC_ROWS == 0
    num_tiles = pl.cdiv(rows, tile_rows)
    needs_mask = (num_tiles * tile_rows != rows)

    kernel = _make_l1_partial_kernel(tile_rows, rows, needs_mask)

    bytes_in = rows * LANES * (a2d.dtype.itemsize + b2d.dtype.itemsize)
    bytes_out = num_tiles * ACC_ROWS * LANES * 4

    partials = pl.pallas_call(
        kernel,
        out_shape=jax.ShapeDtypeStruct((num_tiles * ACC_ROWS, LANES), jnp.float32),
        grid_spec=pltpu.PrefetchScalarGridSpec(
            num_scalar_prefetch=0,
            grid=(num_tiles,),
            in_specs=[
                pl.BlockSpec((tile_rows, LANES), lambda i: (i, 0)),
                pl.BlockSpec((tile_rows, LANES), lambda i: (i, 0)),
            ],
            # One private (32, 128) partial per tile: fully parallel grid axis
            # (v7x megacore shards any tile count across both TensorCores),
            # lane-dense unmasked stores, no init/finalize phases.
            out_specs=pl.BlockSpec((ACC_ROWS, LANES), lambda i: (i, 0)),
        ),
        compiler_params=pltpu.CompilerParams(
            dimension_semantics=("parallel",),
            vmem_limit_bytes=VMEM_LIMIT_BYTES,
        ),
        cost_estimate=pl.CostEstimate(
            flops=3 * rows * LANES,
            transcendentals=0,
            bytes_accessed=bytes_in + bytes_out,
        ),
    )(a2d, b2d)

    # One-time fold of the tiny (num_tiles*32, 128) partials array.
    return jnp.sum(partials)


def rec_loss(model_outputs, l_gausian):
    """JAX/Pallas equivalent of RecLoss.forward (nn.L1Loss(), reduction='mean')."""
    final_out = model_outputs[-1]
    label = l_gausian[-1]
    assert final_out.shape == label.shape

    n = final_out.size
    a = final_out.reshape(-1)
    b = label.reshape(-1)

    rows = n // LANES
    total = jnp.float32(0.0)
    bulk = 0
    if rows >= MIN_ROWS_FOR_PALLAS:
        bulk = rows * LANES
        # Largest tile that is a multiple of the sublane packing and fits the
        # array; the ragged final block (if any) is masked inside the kernel.
        tile_rows = min(MAX_TILE_ROWS, (rows // SUBLANE_PACK) * SUBLANE_PACK)
        a2d = (a if bulk == n else a[:bulk]).reshape(rows, LANES)
        b2d = (b if bulk == n else b[:bulk]).reshape(rows, LANES)
        total = total + _l1_sum_tiled(a2d, b2d, tile_rows)

    if bulk < n:
        # Remainder that does not fill a 128-lane row (< 128 elements when the
        # Pallas path runs): negligible plain-JAX reduction.
        tail = jnp.abs(a[bulk:].astype(jnp.float32) - b[bulk:].astype(jnp.float32))
        total = total + jnp.sum(tail)

    return total / jnp.float32(n)


if __name__ == "__main__":
    key = jax.random.PRNGKey(0)
    k1, k2, k3, k4 = jax.random.split(key, 4)

    # Lists of UNet outputs / label Gaussian-pyramid levels (values in [0, 1],
    # NCHW).  Only the final level of each list is used by the loss.
    model_outputs = [
        jax.random.uniform(k1, (2, 4, 16, 16), dtype=jnp.float32),
        jax.random.uniform(k2, (2, 4, 32, 32), dtype=jnp.float32),
    ]
    l_gausian = [
        jax.random.uniform(k3, (2, 4, 16, 16), dtype=jnp.float32),
        jax.random.uniform(k4, (2, 4, 32, 32), dtype=jnp.float32),
    ]

    loss = rec_loss(model_outputs, l_gausian)
    jax.block_until_ready(loss)
    ref = jnp.mean(jnp.abs(model_outputs[-1] - l_gausian[-1]))
    assert jnp.allclose(loss, ref, rtol=1e-5, atol=1e-6), (loss, ref)

    # Ragged size: multi-tile grid + in-kernel row mask + <128-elem JAX tail.
    k5, k6, k7, k8 = jax.random.split(jax.random.PRNGKey(1), 4)
    x1 = jax.random.uniform(k5, (2, 3, 50, 50), dtype=jnp.float32)   # 15000 elems
    y1 = jax.random.uniform(k6, (2, 3, 50, 50), dtype=jnp.float32)
    l1 = rec_loss([x1], [y1])
    assert jnp.allclose(l1, jnp.mean(jnp.abs(x1 - y1)), rtol=1e-4, atol=1e-6), l1

    # Larger aligned case (0.5M elements, single big tile).
    x2 = jax.random.uniform(k7, (2, 4, 256, 256), dtype=jnp.float32)
    y2 = jax.random.uniform(k8, (2, 4, 256, 256), dtype=jnp.float32)
    l2 = rec_loss([x2], [y2])
    ref2 = jnp.mean(jnp.abs(x2 - y2))
    assert jnp.allclose(l2, ref2, rtol=1e-4, atol=1e-6), (l2, ref2)

    # bf16 coverage: sub-32-bit sublane packing path, f32 accumulation in-kernel.
    k9, k10 = jax.random.split(jax.random.PRNGKey(2), 2)
    x3 = jax.random.uniform(k9, (2, 4, 64, 64), dtype=jnp.float32).astype(jnp.bfloat16)
    y3 = jax.random.uniform(k10, (2, 4, 64, 64), dtype=jnp.float32).astype(jnp.bfloat16)
    l3 = rec_loss([x3], [y3])
    ref3 = jnp.mean(jnp.abs(x3.astype(jnp.float32) - y3.astype(jnp.float32)))
    assert jnp.allclose(l3, ref3, rtol=1e-4, atol=1e-6), (l3, ref3)

    jax.block_until_ready((l1, l2, l3))
    print("KERNEL_OK")
</pallas_src>

<mosaic_0001>
module attributes {stable_mosaic.version = 11 : i64} {
  func.func @kernel(%arg0: i32, %arg1: memref<64x128xf32, #tpu.memory_space<vmem>>, %arg2: memref<64x128xf32, #tpu.memory_space<vmem>>, %arg3: memref<32x128xf32, #tpu.memory_space<vmem>>) attributes {dimension_semantics = [#tpu.dimension_semantics<parallel>], iteration_bounds = array<i64: 1>, scalar_prefetch = 0 : i64, scratch_operands = 0 : i64, tpu.core_type = #tpu.core_type<tc>, window_params = [{transform_indices = @transform_0, window_bounds = array<i64: 64, 128>}, {transform_indices = @transform_1, window_bounds = array<i64: 64, 128>}, {transform_indices = @transform_2, window_bounds = array<i64: 32, 128>}]} {
    %c0 = arith.constant 0 : index
    %c0_0 = arith.constant 0 : index
    %0 = vector.load %arg1[%c0, %c0_0] : memref<64x128xf32, #tpu.memory_space<vmem>>, vector<64x128xf32>
    %c0_1 = arith.constant 0 : index
    %c0_2 = arith.constant 0 : index
    %1 = vector.load %arg2[%c0_1, %c0_2] : memref<64x128xf32, #tpu.memory_space<vmem>>, vector<64x128xf32>
    %2 = arith.subf %0, %1 : vector<64x128xf32>
    %3 = math.absf %2 : vector<64x128xf32>
    %4 = vector.shape_cast %3 : vector<64x128xf32> to vector<2x32x128xf32>
    %cst = arith.constant dense<0.000000e+00> : vector<32x128xf32>
    %5 = vector.multi_reduction <add>, %4, %cst [0] : vector<2x32x128xf32> to vector<32x128xf32>
    %c0_3 = arith.constant 0 : index
    %c0_4 = arith.constant 0 : index
    %6 = vector.load %arg3[%c0_3, %c0_4] : memref<32x128xf32, #tpu.memory_space<vmem>>, vector<32x128xf32>
    tpu.vector_store %arg3[%c0_3, %c0_4], %5 {strides = array<i32>} : memref<32x128xf32, #tpu.memory_space<vmem>>, vector<32x128xf32>,
    return
  }
  func.func @transform_0(%arg0: i32) -> (i32, i32) {
    %c0_i32 = arith.constant 0 : i32
    %c0_i32_0 = arith.constant 0 : i32
    return %arg0, %c0_i32 : i32, i32
  }
  func.func @transform_1(%arg0: i32) -> (i32, i32) {
    %c0_i32 = arith.constant 0 : i32
    %c0_i32_0 = arith.constant 0 : i32
    return %arg0, %c0_i32 : i32, i32
  }
  func.func @transform_2(%arg0: i32) -> (i32, i32) {
    %c0_i32 = arith.constant 0 : i32
    %c0_i32_0 = arith.constant 0 : i32
    return %arg0, %c0_i32 : i32, i32
  }
}

</mosaic_0001>

<bundles_post_ra>
// kernel: tpu_custom_call.1
= control target key start
LH: loop header
LB: loop body
LE: loop exit
PB: predicated region body
PF: predicated region fallthrough
CT: control target
= control target key end

     0   :  { %7 = vsyncpa [#allocation3], 0  ;;  %s225_s0 = inlined_call_operand.hbm [shape: f32[64,128], index: 0, kind: input, shape index: {}]   ;;  %s226_s1 = inlined_call_operand.hbm [shape: f32[64,128], index: 1, kind: input, shape index: {}]   ;;  %s227_s2 = inlined_call_operand.hbm [shape: f32[32,128], index: 2, kind: output, shape index: {}]  }
   0x1   :  { %8 = vsyncpa [#allocation6], 0 }
   0x2   :  { %9 = vsyncpa [#allocation4], 0  ;;  %s14_s11 = sshll.u32 %s225_s0, 4  ;;  %s187_s12 = smov [#allocation2]   ;;  %s15_s11 = int_to_ptr.hbm [resolvable:$true] %s14_s11 }
   0x3   :  { %s16_s13 = sshll.u32 %s187_s12, 4  ;;  %s27_s16 = sshll.u32 %s226_s1, 4  ;;  %s17_s13 = int_to_ptr.vmem [resolvable:$true] %s16_s13  ;;  %s28_s16 = int_to_ptr.hbm [resolvable:$true] %s27_s16 }
   0x4   :  { %s188_s17 = smov 128   ;;  %s189_s18 = smov 8  }
   0x5   :  { %22 = dma.hbm_to_vmem [thread:$0]  %s15_s11, 1024, %s17_s13, [#allocation3], %s188_s17, %s188_s17, %s189_s18  }
   0x6   :  { %s190_s19 = smov [#allocation5]  }
   0x7   :  { %s29_s20 = sshll.u32 %s190_s19, 4  ;;  %s30_s20 = int_to_ptr.vmem [resolvable:$true] %s29_s20 }
   0x8   :  { %35 = dma.hbm_to_vmem [thread:$0]  %s28_s16, 1024, %s30_s20, [#allocation6], %s188_s17, %s188_s17, %s189_s18  }
   0x9   :  { %181 = dma.done.wait [#allocation3], 1024  }
   0xa   :  { %182 = vsyncadd [#allocation3], 4294966272 }
   0xb   :  { %183 = dma.done.wait [#allocation6], 1024  }
   0xc   :  { %184 = vsyncadd [#allocation6], 4294966272  ;;  %v44_v0 = vld [vmem:[#allocation2] sm:$0xff]  ;;  %v45_v5 = vld [vmem:[#allocation2 + $0x8] sm:$0xff]  ;;  %s191_s0 = smov [#allocation7]   ;;  %s90_s23 = sshll.u32 %s227_s2, 4  ;;  %s91_s23 = int_to_ptr.hbm [resolvable:$true] %s90_s23 }
   0xd   :  { %v48_v1 = vld [vmem:[#allocation2 + $0x20] sm:$0xff]  ;;  %v49_v6 = vld [vmem:[#allocation2 + $0x28] sm:$0xff]  ;;  %v46_v10 = vld [vmem:[#allocation2 + $0x10] sm:$0xff]  ;;  %s88_s1 = sshll.u32 %s191_s0, 4  ;;  %s89_s1 = int_to_ptr.vmem [resolvable:$true] %s88_s1 }
   0xe   :  { %v52_v2 = vld [vmem:[#allocation5] sm:$0xff]  ;;  %v53_v8 = vld [vmem:[#allocation5 + $0x8] sm:$0xff]  ;;  %v50_v14 = vld [vmem:[#allocation2 + $0x30] sm:$0xff] }
   0xf   :  { %v56_v3 = vld [vmem:[#allocation5 + $0x20] sm:$0xff]  ;;  %v60_v4 = vsub.f32 %v44_v0, %v52_v2  ;;  %v57_v9 = vld [vmem:[#allocation5 + $0x28] sm:$0xff]  ;;  %v61_v12 = vsub.f32 %v45_v5, %v53_v8  ;;  %v54_v15 = vld [vmem:[#allocation5 + $0x10] sm:$0xff] }
  0x10   :  { %v64_v7 = vsub.f32 %v48_v1, %v56_v3  ;;  %v65_v13 = vsub.f32 %v49_v6, %v57_v9  ;;  %v58_v16 = vld [vmem:[#allocation5 + $0x30] sm:$0xff]  ;;  %v62_v18 = vsub.f32 %v46_v10, %v54_v15  ;;  %v47_v20 = vld [vmem:[#allocation2 + $0x18] sm:$0xff] }
  0x11   :  { %v68_v11 = vand.u32 2147483647, %v60_v4  ;;  %v66_v19 = vsub.f32 %v50_v14, %v58_v16  ;;  %v51_v21 = vld [vmem:[#allocation2 + $0x38] sm:$0xff]  ;;  %v69_v23 = vand.u32 2147483647, %v61_v12 }
  0x12   :  { %v72_v17 = vand.u32 2147483647, %v64_v7  ;;  %v55_v22 = vld [vmem:[#allocation5 + $0x18] sm:$0xff]  ;;  %v73_v24 = vand.u32 2147483647, %v65_v13 }
  0x13   :  { %v59_v25 = vld [vmem:[#allocation5 + $0x38] sm:$0xff]  ;;  %v63_v26 = vsub.f32 %v47_v20, %v55_v22  ;;  %v70_v28 = vand.u32 2147483647, %v62_v18  ;;  %v74_v29 = vand.u32 2147483647, %v66_v19 }
  0x14   :  { %v76_v27 = vadd.f32 %v72_v17, %v68_v11  ;;  %v67_v30 = vsub.f32 %v51_v21, %v59_v25  ;;  %v77_v31 = vadd.f32 %v73_v24, %v69_v23 }
  0x15   :  { %v71_v32 = vand.u32 2147483647, %v63_v26  ;;  %v78_v33 = vadd.f32 %v74_v29, %v70_v28 }
  0x16   :  { %80 = vst [vmem:[#allocation7] sm:$0xff] %v76_v27  ;;  %v75_v34 = vand.u32 2147483647, %v67_v30 }
  0x17   :  { %81 = vst [vmem:[#allocation7 + $0x8] sm:$0xff] %v77_v31 }
  0x18   :  { %82 = vst [vmem:[#allocation7 + $0x10] sm:$0xff] %v78_v33  ;;  %v79_v35 = vadd.f32 %v75_v34, %v71_v32 }
  0x1a   :  { %83 = vst [vmem:[#allocation7 + $0x18] sm:$0xff] %v79_v35 }
  0x1b   :  { %96 = dma.vmem_to_hbm [thread:$0]  %s89_s1, 512, %s91_s23, [#allocation4], %s188_s17, %s188_s17, %s189_s18  }
  0x1c   :  { %185 = dma.done.wait [#allocation4], 512  }
  0x1d   :  { %186 = vsyncadd [#allocation4], 4294966784 }
  0x1e   :  { %101 = vsyncpa [#allocation3], 1 }
  0x1f   :  { %102 = vsyncpa [#allocation6], 1 }
  0x20   :  { %103 = vsyncpa [#allocation4], 1 }

</bundles_post_ra>
